<compile_context>
chip_gen: v6e
topology: v6e:2x2x1
jax: 0.10.0
libtpu: 0.0.40
codegen_flags: <defaults>
</compile_context>

<pallas_src>
import functools

import jax
import jax.numpy as jnp
from jax.experimental import pallas as pl
from jax.experimental.pallas import tpu as pltpu


def _rup(x, m):
    return (x + m - 1) // m * m


def _soft_q_kernel(x_ref, w12_ref, w4_ref, o_ref, *,
                   num_inputs, h_p, r1, r2, compute_dtype):
    """One batch tile of: q = (tanh(tanh(x@W1+b1)@W2+b2))@W4+b4.

    w12_ref row layout (all band offsets are multiples of 16 -> tile aligned
    for f32 and bf16; zero padded):
        [0          : r1       ]  w1  (num_inputs rows used)
        [r1         : r1+16    ]  b1  (replicated across 16 rows)
        [r1+16      : r1+16+r2 ]  w2  (hidden rows used)
        [r1+16+r2   : r1+32+r2 ]  b2  (replicated)
    w4_ref row layout:
        [0  : r2   ]  w4  (hidden rows used)
        [r2 : r2+16]  b4  (replicated)
    """
    f32 = jnp.float32
    x = x_ref[...].astype(compute_dtype)

    w12 = w12_ref[...]
    w4s = w4_ref[...]
    w1 = w12[0:num_inputs, :]
    b1 = w12[r1:r1 + 1, :].astype(f32)
    w2 = w12[r1 + 16:r1 + 16 + h_p, :]
    b2 = w12[r1 + 16 + r2:r1 + 16 + r2 + 1, :].astype(f32)
    w4 = w4s[0:h_p, :]
    b4 = w4s[r2:r2 + 1, :].astype(f32)

    # MXU matmuls with f32 accumulation; bias-add + tanh in f32 (EUP).
    h1 = jnp.tanh(jnp.dot(x, w1, preferred_element_type=f32) + b1)
    h2 = jnp.tanh(jnp.dot(h1.astype(compute_dtype), w2,
                          preferred_element_type=f32) + b2)
    q = jnp.dot(h2.astype(compute_dtype), w4, preferred_element_type=f32) + b4
    o_ref[...] = q.astype(o_ref.dtype)


def pack_params(params, num_inputs, hidden_size, num_actions,
                param_dtype=jnp.bfloat16):
    """Coalesce the 6 parameter arrays into 2 padded, tile-aligned slabs."""
    h_p = _rup(hidden_size, 8)          # hidden width (lane dim of slab 1)
    a_p = _rup(num_actions, 8)          # output width (lane dim of slab 2)
    r1 = _rup(num_inputs, 16)           # 16-row aligned bands (f32 & bf16 safe)
    r2 = _rup(hidden_size, 16)

    w12 = jnp.zeros((r1 + r2 + 32, h_p), param_dtype)
    w12 = w12.at[:num_inputs, :hidden_size].set(params["w1"].astype(param_dtype))
    w12 = w12.at[r1:r1 + 16, :hidden_size].set(
        jnp.broadcast_to(params["b1"].astype(param_dtype)[None, :],
                         (16, hidden_size)))
    w12 = w12.at[r1 + 16:r1 + 16 + hidden_size, :hidden_size].set(
        params["w2"].astype(param_dtype))
    w12 = w12.at[r1 + 16 + r2:r1 + 32 + r2, :hidden_size].set(
        jnp.broadcast_to(params["b2"].astype(param_dtype)[None, :],
                         (16, hidden_size)))

    w4 = jnp.zeros((r2 + 16, a_p), param_dtype)
    w4 = w4.at[:hidden_size, :num_actions].set(params["w4"].astype(param_dtype))
    w4 = w4.at[r2:r2 + 16, :num_actions].set(
        jnp.broadcast_to(params["b4"].astype(param_dtype)[None, :],
                         (16, num_actions)))

    return {"w12": w12, "w4": w4, "h_p": h_p, "a_p": a_p, "r1": r1, "r2": r2,
            "num_inputs": num_inputs, "hidden": hidden_size,
            "num_actions": num_actions, "param_dtype": param_dtype}


def soft_q_forward(state, packed, *, tile_b=1024):
    """state: (B, num_inputs) f32. packed: output of pack_params. -> (B, num_actions) f32."""
    B, num_inputs = state.shape
    assert num_inputs == packed["num_inputs"]
    w12, w4 = packed["w12"], packed["w4"]
    h_p, a_p = packed["h_p"], packed["a_p"]
    r1, r2 = packed["r1"], packed["r2"]
    num_actions = packed["num_actions"]

    # Pad the batch only to the 8-row sublane quantum (no tile-size padding,
    # no feature padding); the partial last tile is clamped by the grid.
    b8 = _rup(B, 8)
    x = state if b8 == B else jnp.pad(state, ((0, b8 - B), (0, 0)))

    # Batch tile: large (amortizes ~0.35us/step overhead) but always >= 2 grid
    # steps when the batch allows it so the "parallel" axis splits across both
    # TensorCores on v7x (harmless on single-TC v5e/v6e).  VMEM per step at
    # tb=1024 is only ~100s of KB double-buffered -> far below every limit.
    tb = min(tile_b, max(8, _rup(pl.cdiv(b8, 2), 8)))
    grid_b = pl.cdiv(b8, tb)

    kernel = functools.partial(
        _soft_q_kernel, num_inputs=num_inputs, h_p=h_p, r1=r1, r2=r2,
        compute_dtype=packed["param_dtype"])

    out = pl.pallas_call(
        kernel,
        out_shape=jax.ShapeDtypeStruct((b8, a_p), jnp.float32),
        grid=(grid_b,),
        in_specs=[
            pl.BlockSpec((tb, num_inputs), lambda i: (i, 0)),
            # Constant index maps: weight slabs stay VMEM-resident across steps.
            pl.BlockSpec(w12.shape, lambda i: (0, 0)),
            pl.BlockSpec(w4.shape, lambda i: (0, 0)),
        ],
        out_specs=pl.BlockSpec((tb, a_p), lambda i: (i, 0)),
        compiler_params=pltpu.CompilerParams(
            dimension_semantics=("parallel",)),
    )(x, w12, w4)

    out = out if b8 == B else out[:B]
    return out if a_p == num_actions else out[:, :num_actions]


def init_params(key, num_inputs, num_actions, hidden_size, init_w=0.003):
    """Synthetic init mirroring the PyTorch module's parameter shapes.

    PyTorch Linear default: U(-1/sqrt(fan_in), 1/sqrt(fan_in));
    linear4 re-initialized to U(-init_w, init_w).
    Weights stored transposed: (in_features, out_features) so y = x @ W + b.
    """
    k1, k2, k3, k4, k5, k6 = jax.random.split(key, 6)
    bound1 = 1.0 / jnp.sqrt(num_inputs)
    bound2 = 1.0 / jnp.sqrt(hidden_size)
    return {
        "w1": jax.random.uniform(k1, (num_inputs, hidden_size), jnp.float32,
                                 -bound1, bound1),
        "b1": jax.random.uniform(k2, (hidden_size,), jnp.float32,
                                 -bound1, bound1),
        "w2": jax.random.uniform(k3, (hidden_size, hidden_size), jnp.float32,
                                 -bound2, bound2),
        "b2": jax.random.uniform(k4, (hidden_size,), jnp.float32,
                                 -bound2, bound2),
        "w4": jax.random.uniform(k5, (hidden_size, num_actions), jnp.float32,
                                 -init_w, init_w),
        "b4": jax.random.uniform(k6, (num_actions,), jnp.float32,
                                 -init_w, init_w),
    }


def reference_forward(state, params, param_dtype=jnp.float32):
    """Pure-JAX reference. With param_dtype=bf16 it mirrors the kernel's
    bf16-operand / f32-accumulation behaviour exactly."""
    pd = param_dtype

    def lin(x, w, b):
        return (jnp.dot(x.astype(pd), w.astype(pd),
                        preferred_element_type=jnp.float32)
                + b.astype(pd).astype(jnp.float32)[None, :])

    h1 = jnp.tanh(lin(state, params["w1"], params["b1"]))
    h2 = jnp.tanh(lin(h1, params["w2"], params["b2"]))
    return lin(h2, params["w4"], params["b4"])


if __name__ == "__main__":
    num_inputs, num_actions, hidden_size = 8, 4, 32
    batch = 8

    key = jax.random.PRNGKey(0)
    k_params, k_state = jax.random.split(key)
    params = init_params(k_params, num_inputs, num_actions, hidden_size)
    state = jax.random.normal(k_state, (batch, num_inputs), jnp.float32)

    packed = pack_params(params, num_inputs, hidden_size, num_actions,
                         param_dtype=jnp.bfloat16)
    out = jax.block_until_ready(soft_q_forward(state, packed))
    assert out.shape == (batch, num_actions), out.shape

    # Tight check vs a reference that mirrors the kernel's bf16 operands + f32
    # accumulation (isolates kernel correctness from quantization error).
    ref_bf16 = reference_forward(state, params, param_dtype=jnp.bfloat16)
    err_bf16 = float(jnp.max(jnp.abs(out - ref_bf16)))
    assert jnp.allclose(out, ref_bf16, atol=5e-4, rtol=1e-3), (
        f"max abs err vs bf16-mirrored reference: {err_bf16}")

    # Loose check vs the pure-f32 module semantics (bounds bf16 quantization).
    ref_f32 = reference_forward(state, params, param_dtype=jnp.float32)
    err_f32 = float(jnp.max(jnp.abs(out - ref_f32)))
    assert jnp.allclose(out, ref_f32, atol=5e-3, rtol=5e-2), (
        f"max abs err vs f32 reference: {err_f32}")

    print("KERNEL_OK")
</pallas_src>

<mosaic_0001>
module attributes {stable_mosaic.version = 11 : i64} {
  func.func @_soft_q_kernel(%arg0: i32, %arg1: memref<8x8xf32, #tpu.memory_space<vmem>>, %arg2: memref<80x32xbf16, #tpu.memory_space<vmem>>, %arg3: memref<48x8xbf16, #tpu.memory_space<vmem>>, %arg4: memref<8x8xf32, #tpu.memory_space<vmem>>) attributes {dimension_semantics = [#tpu.dimension_semantics<parallel>], iteration_bounds = array<i64: 1>, scalar_prefetch = 0 : i64, scratch_operands = 0 : i64, tpu.core_type = #tpu.core_type<tc>, window_params = [{transform_indices = @transform_0, window_bounds = array<i64: 8, 8>}, {pipeline_mode = #tpu.pipeline_mode<synchronous>, transform_indices = @transform_1, window_bounds = array<i64: 80, 32>}, {pipeline_mode = #tpu.pipeline_mode<synchronous>, transform_indices = @transform_2, window_bounds = array<i64: 48, 8>}, {transform_indices = @transform_3, window_bounds = array<i64: 8, 8>}]} {
    %c0 = arith.constant 0 : index
    %c0_0 = arith.constant 0 : index
    %0 = vector.load %arg1[%c0, %c0_0] : memref<8x8xf32, #tpu.memory_space<vmem>>, vector<8x8xf32>
    %1 = arith.truncf %0 : vector<8x8xf32> to vector<8x8xbf16>
    %c0_1 = arith.constant 0 : index
    %c0_2 = arith.constant 0 : index
    %2 = vector.load %arg2[%c0_1, %c0_2] : memref<80x32xbf16, #tpu.memory_space<vmem>>, vector<80x32xbf16>
    %c0_3 = arith.constant 0 : index
    %c0_4 = arith.constant 0 : index
    %3 = vector.load %arg3[%c0_3, %c0_4] : memref<48x8xbf16, #tpu.memory_space<vmem>>, vector<48x8xbf16>
    %4 = vector.extract_strided_slice %2 {offsets = [0, 0], sizes = [8, 32], strides = [1, 1]} : vector<80x32xbf16> to vector<8x32xbf16>
    %5 = vector.extract_strided_slice %2 {offsets = [16, 0], sizes = [1, 32], strides = [1, 1]} : vector<80x32xbf16> to vector<1x32xbf16>
    %6 = arith.extf %5 : vector<1x32xbf16> to vector<1x32xf32>
    %7 = vector.extract_strided_slice %2 {offsets = [32, 0], sizes = [32, 32], strides = [1, 1]} : vector<80x32xbf16> to vector<32x32xbf16>
    %8 = vector.extract_strided_slice %2 {offsets = [64, 0], sizes = [1, 32], strides = [1, 1]} : vector<80x32xbf16> to vector<1x32xbf16>
    %9 = arith.extf %8 : vector<1x32xbf16> to vector<1x32xf32>
    %10 = vector.extract_strided_slice %3 {offsets = [0, 0], sizes = [32, 8], strides = [1, 1]} : vector<48x8xbf16> to vector<32x8xbf16>
    %11 = vector.extract_strided_slice %3 {offsets = [32, 0], sizes = [1, 8], strides = [1, 1]} : vector<48x8xbf16> to vector<1x8xbf16>
    %12 = arith.extf %11 : vector<1x8xbf16> to vector<1x8xf32>
    %cst = arith.constant dense<0.000000e+00> : vector<8x32xf32>
    %13 = tpu.matmul %1, %4, %cst {dimension_numbers = #tpu.dot_dimension_numbers<[1], [0], [0], [1], [0, 0, 1, 1], [], []>} : vector<8x8xbf16>, vector<8x32xbf16>, vector<8x32xf32> -> vector<8x32xf32>
    %14 = vector.broadcast %6 : vector<1x32xf32> to vector<8x32xf32>
    %15 = arith.addf %13, %14 : vector<8x32xf32>
    %16 = math.tanh %15 : vector<8x32xf32>
    %17 = arith.truncf %16 : vector<8x32xf32> to vector<8x32xbf16>
    %cst_5 = arith.constant dense<0.000000e+00> : vector<8x32xf32>
    %18 = tpu.matmul %17, %7, %cst_5 {dimension_numbers = #tpu.dot_dimension_numbers<[1], [0], [0], [1], [0, 0, 1, 1], [], []>} : vector<8x32xbf16>, vector<32x32xbf16>, vector<8x32xf32> -> vector<8x32xf32>
    %19 = vector.broadcast %9 : vector<1x32xf32> to vector<8x32xf32>
    %20 = arith.addf %18, %19 : vector<8x32xf32>
    %21 = math.tanh %20 : vector<8x32xf32>
    %22 = arith.truncf %21 : vector<8x32xf32> to vector<8x32xbf16>
    %cst_6 = arith.constant dense<0.000000e+00> : vector<8x8xf32>
    %23 = tpu.matmul %22, %10, %cst_6 {dimension_numbers = #tpu.dot_dimension_numbers<[1], [0], [0], [1], [0, 0, 1, 1], [], []>} : vector<8x32xbf16>, vector<32x8xbf16>, vector<8x8xf32> -> vector<8x8xf32>
    %24 = vector.broadcast %12 : vector<1x8xf32> to vector<8x8xf32>
    %25 = arith.addf %23, %24 : vector<8x8xf32>
    %c0_7 = arith.constant 0 : index
    %c0_8 = arith.constant 0 : index
    %26 = vector.load %arg4[%c0_7, %c0_8] : memref<8x8xf32, #tpu.memory_space<vmem>>, vector<8x8xf32>
    tpu.vector_store %arg4[%c0_7, %c0_8], %25 {strides = array<i32>} : memref<8x8xf32, #tpu.memory_space<vmem>>, vector<8x8xf32>,
    return
  }
  func.func @transform_0(%arg0: i32) -> (i32, i32) {
    %c0_i32 = arith.constant 0 : i32
    %c0_i32_0 = arith.constant 0 : i32
    return %arg0, %c0_i32 : i32, i32
  }
  func.func @transform_1(%arg0: i32) -> (i32, i32) {
    %c0_i32 = arith.constant 0 : i32
    %c0_i32_0 = arith.constant 0 : i32
    %c0_i32_1 = arith.constant 0 : i32
    return %c0_i32, %c0_i32_0 : i32, i32
  }
  func.func @transform_2(%arg0: i32) -> (i32, i32) {
    %c0_i32 = arith.constant 0 : i32
    %c0_i32_0 = arith.constant 0 : i32
    %c0_i32_1 = arith.constant 0 : i32
    return %c0_i32, %c0_i32_0 : i32, i32
  }
  func.func @transform_3(%arg0: i32) -> (i32, i32) {
    %c0_i32 = arith.constant 0 : i32
    %c0_i32_0 = arith.constant 0 : i32
    return %arg0, %c0_i32 : i32, i32
  }
}

</mosaic_0001>

<bundles_post_ra>
// kernel: tpu_custom_call.1
= control target key start
LH: loop header
LB: loop body
LE: loop exit
PB: predicated region body
PF: predicated region fallthrough
CT: control target
= control target key end

     0   :  { %vm41_vm0 = vcmask 1043456   ;;  %v293_v2 = vmov 0.0   ;;  %vm294_vm1 = vmmov 0   ;;  %vm37_vm2 = vcmask 64512   ;;  %s347_s0 = inlined_call_operand.vmem [shape: f32[8,8], index: 0, kind: input, shape index: {}]   ;;  %s348_s1 = inlined_call_operand.vmem [shape: bf16[80,32], index: 1, kind: input, shape index: {}]   ;;  %s349_s2 = inlined_call_operand.vmem [shape: bf16[48,8], index: 2, kind: input, shape index: {}]   ;;  %s350_s3 = inlined_call_operand.hbm [shape: f32[8,8], index: 3, kind: output, shape index: {}]  }
   0x1   :  { %v18_v0 = vld [vmem:[%s348_s1] sm:$0xf]  ;;  %238 = vmatprep.subr.bf16.mxu0 %v293_v2  ;;  %240 = vmatprep.mubr.msk.bf16.mxu0 %vm294_vm1, %v293_v2 }
   0x2   :  { %v16_v1 = vld [vmem:[%s347_s0] sm:$0xff]  ;;  %v43_v3 = vsel %vm41_vm0, %v18_v0, 0  ;;  %244 = vmatprep.subr.bf16.mxu1 %v293_v2  ;;  %248 = vmatprep.mubr.msk.bf16.mxu1 %vm294_vm1, %v293_v2 }
   0x3   :  { %v17_v4 = vpack.c.bf16 %v16_v1, %v16_v1  ;;  %239 = vmatpush3.bf16.msra.mxu0 %v43_v3 }
   0x4   :  { %252 = vmatprep.subr.bf16.mxu0 %v293_v2 }
   0x6   :  { %241 = vmatmul.mubr.msk.bf16.vlgmr.msra.gmra.mxu0 %vm37_vm2, %v17_v4 }
   0x7   :  { %8 = vsyncpa [#allocation3], 0  ;;  %256 = vmatprep.mubr.msk.bf16.mxu0 %vm294_vm1, %v293_v2  ;;  %v263_v5 = vld [vmem:[%s348_s1 + $0x18] sm:$0xff]   ;;  %v264_v6 = vld [vmem:[%s348_s1 + $0x10] sm:$0xff]   ;;  %v33_v7 = vlaneseq  ;;  %vm103_vm3 = vcmask 261120   ;;  %s295_s26 = smov [#allocation2]  }
   0x8   :  { %245 = vmatpush3.bf16.msra.mxu1 %v263_v5  ;;  %v19_v9 = vld [vmem:[%s348_s1 + $0x8] ss:$24 sps:$4 sm:$0xff]   ;;  %v29_v31 = vld [vmem:[%s349_s2 + $0x10] sm:$0xf]  ;;  %s215_s27 = sshll.u32 %s295_s26, 4  ;;  %s216_s27 = int_to_ptr.vmem [resolvable:$true] %s215_s27 }
   0x9   :  { %246 = vmatprep.subr.bf16.mxu1 %v293_v2  ;;  %v34_v8 = vshrl.u32 %v33_v7, 7  ;;  %v30_v10 = vunpack.c.l.bf16 %v19_v9  ;;  %v265_v20 = vld [vmem:[%s349_s2 + $0x8] sm:$0xff]   ;;  %v266_v21 = vld [vmem:[%s349_s2] sm:$0xff]   ;;  %v31_v22 = vunpack.c.h.bf16 %v19_v9  ;;  %v32_v32 = vunpack.c.l.bf16 %v29_v31  ;;  %s271_s28 = scalar_lea.vmem %s216_s27, 128  ;;  %p276_p1 = scmp.lt.s32.totalorder %s216_s27, %s216_s27 }
   0xa   :  { %253 = vmatpush3.bf16.msra.mxu0 %v265_v20  ;;  %p272_p0 = scmp.ne.s32.totalorder %s216_s27, %s271_s28  ;;  %p277_p2 = scmp.lt.s32.totalorder %s271_s28, %s271_s28 }
   0xb   :  { %v35_v11 = vsub.s32 0, %v34_v8  ;;  %254 = vmatprep.subr.bf16.mxu0 %v293_v2 }
   0xc   :  { %247 = vmatpush3.bf16.msra.mxu1 %v264_v6  ;;  %p278_p3 = por %p277_p2, %p276_p1 }
   0xd   :  { %v36_v12 = vrot.slane %v30_v10, %v35_v11  ;;  %v90_v23 = vrot.slane %v31_v22, %v35_v11  ;;  %v152_v33 = vrot.slane %v32_v32, %v35_v11 }
   0xe   :  { %255 = vmatpush3.bf16.msra.mxu0 %v266_v21  ;;  %p279_p4 = pnand %p278_p3, %p272_p0 }
  0xc6   :  { %v79_v13 = vpop.f32.mrf.mxu0 }
  0xc7   :  { %v80_v14 = vadd.f32 %v79_v13, %v36_v12 }
  0xc8   :  { %v242_v15 = vpop.f32.mrf.mxu0 }
  0xc9   :  { %267 = vtanh.f32 %v80_v14 }
  0xca   :  { %v82_v16 = vpop.f32.mrf.mxu0 }
  0xcc   :  { %v243_v17 = vpop.f32.mrf.mxu0 }
  0xd6   :  { %v268_v18 = vpop.eup %267 }
  0xd7   :  { %v86_v19 = vpack.c.bf16 %v268_v18, %v268_v18 }
  0xd9   :  { %249 = vmatmul.mubr.msk.bf16.vlgmr.msra.gmra.mxu1 %vm103_vm3, %v86_v19 }
 0x199   :  { %v141_v24 = vpop.f32.mrf.mxu1 }
 0x19a   :  { %v142_v25 = vadd.f32 %v141_v24, %v90_v23 }
 0x19b   :  { %v250_v26 = vpop.f32.mrf.mxu1 }
 0x19c   :  { %269 = vtanh.f32 %v142_v25 }
 0x19d   :  { %v144_v27 = vpop.f32.mrf.mxu1 }
 0x19f   :  { %v251_v28 = vpop.f32.mrf.mxu1 }
 0x1a9   :  { %v270_v29 = vpop.eup %269 }
 0x1aa   :  { %v148_v30 = vpack.c.bf16 %v270_v29, %v270_v29 }
 0x1ac   :  { %257 = vmatmul.mubr.msk.bf16.vlgmr.msra.gmra.mxu0 %vm103_vm3, %v148_v30 }
 0x26c   :  { %v202_v34 = vpop.f32.mrf.mxu0 }
 0x26d   :  { %v203_v35 = vadd.f32 %v202_v34, %v152_v33 }
 0x26e   :  { %v258_v36 = vpop.f32.mrf.mxu0 }
 0x26f   :  { %208 = vst.msk [vmem:[#allocation2] sm:$0xff] %vm37_vm2, %v203_v35 }
 0x270   :  { %v205_v37 = vpop.f32.mrf.mxu0 }
 0x271   :  { %282 = shalt.err (!%p279_p4)
}
 0x272   :  { %218 = dma.vmem_to_hbm [thread:$0]  %s216_s27, 128, %s350_s3, [#allocation3]   ;;  %v259_v38 = vpop.f32.mrf.mxu0 }
 0x273   :  { %291 = dma.done.wait [#allocation3], 128  }
 0x274   :  { %292 = vsyncadd [#allocation3], 4294967168 }
 0x275   :  { %222 = vsyncpa [#allocation3], 1 }

</bundles_post_ra>
